<compile_context>
chip_gen: v5e
topology: v5e:2x2
jax: 0.10.0
libtpu: 0.0.40
codegen_flags: <defaults>
</compile_context>

<pallas_src>
import functools

import jax
import jax.numpy as jnp
from jax.experimental import pallas as pl
from jax.experimental.pallas import tpu as pltpu

HIDDEN1 = 512
HIDDEN2 = 264
HIDDEN2_PAD = 384   # 264 rounded up to a multiple of 128 (lane-dense fc2/fc3)
CLASSES_PAD = 128   # logits padded to one full lane group (dense stores)


def _round_up(x, m):
    return (x + m - 1) // m * m


# --------------------------------------------------------------------------- #
# Kernel
# --------------------------------------------------------------------------- #
def ann_kernel(x_ref, w1_ref, b1_ref, w2_ref, b2_ref, w3_ref, b3_ref, o_ref):
    # fc1: bf16 MXU matmul, f32 accumulation; bias + ReLU in f32, then cast to
    # bf16 right away so the f32 intermediate is not kept live into fc2.
    h1 = jnp.dot(x_ref[...], w1_ref[...], preferred_element_type=jnp.float32)
    h1 = jnp.maximum(h1 + b1_ref[...], 0.0).astype(w2_ref.dtype)

    # fc2 + bias + ReLU (same recipe)
    h2 = jnp.dot(h1, w2_ref[...], preferred_element_type=jnp.float32)
    h2 = jnp.maximum(h2 + b2_ref[...], 0.0).astype(w3_ref.dtype)

    # fc3 (logits, no activation)
    out = jnp.dot(h2, w3_ref[...], preferred_element_type=jnp.float32)
    o_ref[...] = (out + b3_ref[...]).astype(o_ref.dtype)


# --------------------------------------------------------------------------- #
# One-time parameter preparation (hoisted out of the per-call forward path)
# --------------------------------------------------------------------------- #
def prepare_params(params, compute_dtype=jnp.bfloat16):
    """Pad weight lane dims (264->384, classes->128) and cast matmul inputs to
    bf16 ONCE.  Biases stay f32 (added to the f32 MXU accumulator)."""
    w1, b1 = params["w1"], params["b1"]
    w2, b2 = params["w2"], params["b2"]
    w3, b3 = params["w3"], params["b3"]
    num_classes = w3.shape[1]

    w2p = jnp.pad(w2, ((0, 0), (0, HIDDEN2_PAD - HIDDEN2)))
    b2p = jnp.pad(b2, ((0, 0), (0, HIDDEN2_PAD - HIDDEN2)))
    w3p = jnp.pad(w3, ((0, HIDDEN2_PAD - HIDDEN2), (0, CLASSES_PAD - num_classes)))
    b3p = jnp.pad(b3, ((0, 0), (0, CLASSES_PAD - num_classes)))

    return {
        "w1": w1.astype(compute_dtype), "b1": b1.astype(jnp.float32),
        "w2": w2p.astype(compute_dtype), "b2": b2p.astype(jnp.float32),
        "w3": w3p.astype(compute_dtype), "b3": b3p.astype(jnp.float32),
        "num_classes": num_classes,
        "input_size": w1.shape[0],
    }


# --------------------------------------------------------------------------- #
# Tiling / grid selection
# --------------------------------------------------------------------------- #
def _pick_tile(batch, tm):
    """Pick (tile_m, padded_batch).

    * tiny batch: one step, block == full padded array (legal & cheapest)
    * otherwise : 256-multiple tiles (v6e/v7x MXU alignment; also fine on v5e),
      capped so the grid has >= 2 steps (v7x megacore sharding via "parallel").
    """
    bp = _round_up(batch, 8)
    if bp <= 256:
        return bp, bp
    tile = max(256, (min(tm, bp) // 256) * 256)
    tile = min(tile, _round_up(pl.cdiv(bp, 2), 256))  # keep >= 2 grid steps
    bp = _round_up(bp, tile)
    return tile, bp


def _resident(shape):
    """BlockSpec for a VMEM-resident array (constant index_map).  Single
    buffered: with a constant block index there is no re-fetch to hide."""
    idx = lambda i: (0,) * len(shape)
    try:
        return pl.BlockSpec(shape, idx, pipeline_mode=pl.Buffered(1))
    except (AttributeError, TypeError):   # older jax without pipeline_mode
        return pl.BlockSpec(shape, idx)


# --------------------------------------------------------------------------- #
# Forward
# --------------------------------------------------------------------------- #
def ann_forward(x, prepped, *, tm=512, out_dtype=jnp.float32):
    """x: [batch, input_size] float32.  `prepped` from prepare_params().

    tm: batch tile (rows).  Default 512 for v6e/v7x; 256 is a fine choice on
    v5e (197 TF/s MXU).  out_dtype=jnp.bfloat16 halves the per-step logits
    writeback (useful on v5e's slower HBM); default f32 mirrors PyTorch.
    """
    w1, b1 = prepped["w1"], prepped["b1"]
    w2, b2 = prepped["w2"], prepped["b2"]
    w3, b3 = prepped["w3"], prepped["b3"]
    num_classes = prepped["num_classes"]

    batch, input_size = x.shape
    assert input_size == prepped["input_size"]

    tile_m, bp = _pick_tile(batch, tm)
    xp = jnp.pad(x, ((0, bp - batch), (0, 0))).astype(w1.dtype)

    grid = (bp // tile_m,)

    flops = 2 * bp * (input_size * HIDDEN1
                      + HIDDEN1 * HIDDEN2_PAD
                      + HIDDEN2_PAD * CLASSES_PAD)
    bytes_accessed = (
        sum(int(a.size) * a.dtype.itemsize for a in (xp, w1, b1, w2, b2, w3, b3))
        + bp * CLASSES_PAD * jnp.dtype(out_dtype).itemsize)

    out_padded = pl.pallas_call(
        ann_kernel,
        out_shape=jax.ShapeDtypeStruct((bp, CLASSES_PAD), out_dtype),
        grid=grid,
        in_specs=[
            pl.BlockSpec((tile_m, input_size), lambda i: (i, 0)),
            _resident(w1.shape), _resident(b1.shape),
            _resident(w2.shape), _resident(b2.shape),
            _resident(w3.shape), _resident(b3.shape),
        ],
        out_specs=pl.BlockSpec((tile_m, CLASSES_PAD), lambda i: (i, 0)),
        compiler_params=pltpu.CompilerParams(
            dimension_semantics=("parallel",)),
        cost_estimate=pl.CostEstimate(
            flops=flops, transcendentals=0, bytes_accessed=bytes_accessed),
    )(xp, w1, b1, w2, b2, w3, b3)

    return out_padded[:batch, :num_classes].astype(jnp.float32)


# --------------------------------------------------------------------------- #
# Parameter init (nn.Linear default: U(-1/sqrt(fan_in), 1/sqrt(fan_in)))
# Weights stored transposed relative to PyTorch ([in, out]).
# --------------------------------------------------------------------------- #
def init_params(key, input_size, num_classes=8):
    dims = [(input_size, HIDDEN1), (HIDDEN1, HIDDEN2), (HIDDEN2, num_classes)]
    params = {}
    for i, (fan_in, fan_out) in enumerate(dims, start=1):
        key, kw, kb = jax.random.split(key, 3)
        bound = 1.0 / (fan_in ** 0.5)
        params[f"w{i}"] = jax.random.uniform(
            kw, (fan_in, fan_out), jnp.float32, -bound, bound)
        params[f"b{i}"] = jax.random.uniform(
            kb, (1, fan_out), jnp.float32, -bound, bound)
    return params


# --------------------------------------------------------------------------- #
# Demo / self-test
# --------------------------------------------------------------------------- #
if __name__ == "__main__":
    key = jax.random.PRNGKey(0)
    input_size, num_classes = 32, 8

    key, kp = jax.random.split(key)
    params = init_params(kp, input_size, num_classes)
    prepped = prepare_params(params)          # one-time pad + bf16 cast

    fwd = jax.jit(functools.partial(ann_forward, prepped=prepped))

    # Reference 1: mirrors the bf16-matmul / f32-accumulate recipe exactly.
    def ref_bf16(x, p, cd=jnp.bfloat16):
        h1 = jnp.maximum(
            jnp.dot(x.astype(cd), p["w1"].astype(cd),
                    preferred_element_type=jnp.float32) + p["b1"], 0.0)
        h2 = jnp.maximum(
            jnp.dot(h1.astype(cd), p["w2"].astype(cd),
                    preferred_element_type=jnp.float32) + p["b2"], 0.0)
        return jnp.dot(h2.astype(cd), p["w3"].astype(cd),
                       preferred_element_type=jnp.float32) + p["b3"]

    # Reference 2: pure-f32 PyTorch semantics (looser tolerance, bf16 matmuls).
    def ref_f32(x, p):
        h1 = jnp.maximum(x @ p["w1"] + p["b1"], 0.0)
        h2 = jnp.maximum(h1 @ p["w2"] + p["b2"], 0.0)
        return h2 @ p["w3"] + p["b3"]

    # Case 1: tiny batch (single-step grid, full-array batch block).
    key, kx = jax.random.split(key)
    x_small = jax.random.normal(kx, (2, input_size), jnp.float32)
    out_small = fwd(x_small)
    jax.block_until_ready(out_small)
    assert out_small.shape == (2, num_classes)
    assert jnp.allclose(out_small, ref_bf16(x_small, params),
                        atol=1e-3, rtol=1e-3), "small-batch mismatch (bf16 ref)"
    assert jnp.allclose(out_small, ref_f32(x_small, params),
                        atol=5e-2, rtol=5e-2), "small-batch mismatch (f32 ref)"

    # Case 2: larger batch exercising the multi-step (2x256) tiled grid path.
    key, kx = jax.random.split(key)
    x_big = jax.random.normal(kx, (512, input_size), jnp.float32)
    out_big = fwd(x_big)
    jax.block_until_ready(out_big)
    assert out_big.shape == (512, num_classes)
    assert jnp.allclose(out_big, ref_bf16(x_big, params),
                        atol=1e-3, rtol=1e-3), "big-batch mismatch (bf16 ref)"
    assert jnp.allclose(out_big, ref_f32(x_big, params),
                        atol=5e-2, rtol=5e-2), "big-batch mismatch (f32 ref)"

    print("KERNEL_OK")
</pallas_src>

<mosaic_0001>
module attributes {stable_mosaic.version = 11 : i64} {
  func.func @ann_kernel(%arg0: i32, %arg1: memref<8x32xbf16, #tpu.memory_space<vmem>>, %arg2: memref<32x512xbf16, #tpu.memory_space<vmem>>, %arg3: memref<1x512xf32, #tpu.memory_space<vmem>>, %arg4: memref<512x384xbf16, #tpu.memory_space<vmem>>, %arg5: memref<1x384xf32, #tpu.memory_space<vmem>>, %arg6: memref<384x128xbf16, #tpu.memory_space<vmem>>, %arg7: memref<1x128xf32, #tpu.memory_space<vmem>>, %arg8: memref<8x128xf32, #tpu.memory_space<vmem>>) attributes {dimension_semantics = [#tpu.dimension_semantics<parallel>], iteration_bounds = array<i64: 1>, scalar_prefetch = 0 : i64, scratch_operands = 0 : i64, tpu.core_type = #tpu.core_type<tc>, window_params = [{transform_indices = @transform_0, window_bounds = array<i64: 8, 32>}, {pipeline_mode = #tpu.pipeline_mode<synchronous>, transform_indices = @transform_1, window_bounds = array<i64: 32, 512>}, {pipeline_mode = #tpu.pipeline_mode<synchronous>, transform_indices = @transform_2, window_bounds = array<i64: 1, 512>}, {pipeline_mode = #tpu.pipeline_mode<synchronous>, transform_indices = @transform_3, window_bounds = array<i64: 512, 384>}, {pipeline_mode = #tpu.pipeline_mode<synchronous>, transform_indices = @transform_4, window_bounds = array<i64: 1, 384>}, {pipeline_mode = #tpu.pipeline_mode<synchronous>, transform_indices = @transform_5, window_bounds = array<i64: 384, 128>}, {pipeline_mode = #tpu.pipeline_mode<synchronous>, transform_indices = @transform_6, window_bounds = array<i64: 1, 128>}, {transform_indices = @transform_7, window_bounds = array<i64: 8, 128>}]} {
    %c0 = arith.constant 0 : index
    %c0_0 = arith.constant 0 : index
    %0 = vector.load %arg1[%c0, %c0_0] : memref<8x32xbf16, #tpu.memory_space<vmem>>, vector<8x32xbf16>
    %c0_1 = arith.constant 0 : index
    %c0_2 = arith.constant 0 : index
    %1 = vector.load %arg2[%c0_1, %c0_2] : memref<32x512xbf16, #tpu.memory_space<vmem>>, vector<32x512xbf16>
    %cst = arith.constant dense<0.000000e+00> : vector<8x512xf32>
    %2 = tpu.matmul %0, %1, %cst {dimension_numbers = #tpu.dot_dimension_numbers<[1], [0], [0], [1], [0, 0, 1, 1], [], []>} : vector<8x32xbf16>, vector<32x512xbf16>, vector<8x512xf32> -> vector<8x512xf32>
    %c0_3 = arith.constant 0 : index
    %c0_4 = arith.constant 0 : index
    %3 = vector.load %arg3[%c0_3, %c0_4] : memref<1x512xf32, #tpu.memory_space<vmem>>, vector<1x512xf32>
    %4 = vector.broadcast %3 : vector<1x512xf32> to vector<8x512xf32>
    %5 = arith.addf %2, %4 : vector<8x512xf32>
    %cst_5 = arith.constant 0.000000e+00 : f32
    %6 = vector.broadcast %cst_5 : f32 to vector<8x512xf32>
    %7 = arith.maximumf %5, %6 : vector<8x512xf32>
    %8 = arith.truncf %7 : vector<8x512xf32> to vector<8x512xbf16>
    %c0_6 = arith.constant 0 : index
    %c0_7 = arith.constant 0 : index
    %9 = vector.load %arg4[%c0_6, %c0_7] : memref<512x384xbf16, #tpu.memory_space<vmem>>, vector<512x384xbf16>
    %cst_8 = arith.constant dense<0.000000e+00> : vector<8x384xf32>
    %10 = tpu.matmul %8, %9, %cst_8 {dimension_numbers = #tpu.dot_dimension_numbers<[1], [0], [0], [1], [0, 0, 1, 1], [], []>} : vector<8x512xbf16>, vector<512x384xbf16>, vector<8x384xf32> -> vector<8x384xf32>
    %c0_9 = arith.constant 0 : index
    %c0_10 = arith.constant 0 : index
    %11 = vector.load %arg5[%c0_9, %c0_10] : memref<1x384xf32, #tpu.memory_space<vmem>>, vector<1x384xf32>
    %12 = vector.broadcast %11 : vector<1x384xf32> to vector<8x384xf32>
    %13 = arith.addf %10, %12 : vector<8x384xf32>
    %cst_11 = arith.constant 0.000000e+00 : f32
    %14 = vector.broadcast %cst_11 : f32 to vector<8x384xf32>
    %15 = arith.maximumf %13, %14 : vector<8x384xf32>
    %16 = arith.truncf %15 : vector<8x384xf32> to vector<8x384xbf16>
    %c0_12 = arith.constant 0 : index
    %c0_13 = arith.constant 0 : index
    %17 = vector.load %arg6[%c0_12, %c0_13] : memref<384x128xbf16, #tpu.memory_space<vmem>>, vector<384x128xbf16>
    %cst_14 = arith.constant dense<0.000000e+00> : vector<8x128xf32>
    %18 = tpu.matmul %16, %17, %cst_14 {dimension_numbers = #tpu.dot_dimension_numbers<[1], [0], [0], [1], [0, 0, 1, 1], [], []>} : vector<8x384xbf16>, vector<384x128xbf16>, vector<8x128xf32> -> vector<8x128xf32>
    %c0_15 = arith.constant 0 : index
    %c0_16 = arith.constant 0 : index
    %19 = vector.load %arg7[%c0_15, %c0_16] : memref<1x128xf32, #tpu.memory_space<vmem>>, vector<1x128xf32>
    %20 = vector.broadcast %19 : vector<1x128xf32> to vector<8x128xf32>
    %21 = arith.addf %18, %20 : vector<8x128xf32>
    %c0_17 = arith.constant 0 : index
    %c0_18 = arith.constant 0 : index
    %22 = vector.load %arg8[%c0_17, %c0_18] : memref<8x128xf32, #tpu.memory_space<vmem>>, vector<8x128xf32>
    tpu.vector_store %arg8[%c0_17, %c0_18], %21 {strides = array<i32>} : memref<8x128xf32, #tpu.memory_space<vmem>>, vector<8x128xf32>,
    return
  }
  func.func @transform_0(%arg0: i32) -> (i32, i32) {
    %c0_i32 = arith.constant 0 : i32
    %c0_i32_0 = arith.constant 0 : i32
    return %arg0, %c0_i32 : i32, i32
  }
  func.func @transform_1(%arg0: i32) -> (i32, i32) {
    %c0_i32 = arith.constant 0 : i32
    %c0_i32_0 = arith.constant 0 : i32
    %c0_i32_1 = arith.constant 0 : i32
    return %c0_i32, %c0_i32_0 : i32, i32
  }
  func.func @transform_2(%arg0: i32) -> (i32, i32) {
    %c0_i32 = arith.constant 0 : i32
    %c0_i32_0 = arith.constant 0 : i32
    %c0_i32_1 = arith.constant 0 : i32
    return %c0_i32, %c0_i32_0 : i32, i32
  }
  func.func @transform_3(%arg0: i32) -> (i32, i32) {
    %c0_i32 = arith.constant 0 : i32
    %c0_i32_0 = arith.constant 0 : i32
    %c0_i32_1 = arith.constant 0 : i32
    return %c0_i32, %c0_i32_0 : i32, i32
  }
  func.func @transform_4(%arg0: i32) -> (i32, i32) {
    %c0_i32 = arith.constant 0 : i32
    %c0_i32_0 = arith.constant 0 : i32
    %c0_i32_1 = arith.constant 0 : i32
    return %c0_i32, %c0_i32_0 : i32, i32
  }
  func.func @transform_5(%arg0: i32) -> (i32, i32) {
    %c0_i32 = arith.constant 0 : i32
    %c0_i32_0 = arith.constant 0 : i32
    %c0_i32_1 = arith.constant 0 : i32
    return %c0_i32, %c0_i32_0 : i32, i32
  }
  func.func @transform_6(%arg0: i32) -> (i32, i32) {
    %c0_i32 = arith.constant 0 : i32
    %c0_i32_0 = arith.constant 0 : i32
    %c0_i32_1 = arith.constant 0 : i32
    return %c0_i32, %c0_i32_0 : i32, i32
  }
  func.func @transform_7(%arg0: i32) -> (i32, i32) {
    %c0_i32 = arith.constant 0 : i32
    %c0_i32_0 = arith.constant 0 : i32
    return %arg0, %c0_i32 : i32, i32
  }
}

</mosaic_0001>

<bundles_post_ra>
// kernel: ann_forward.1
= control target key start
LH: loop header
LB: loop body
LE: loop exit
PB: predicated region body
PF: predicated region fallthrough
CT: control target
= control target key end

     0   :  { %12 = vsyncpa [#allocation3], 0  ;;  %s2088_s0 = inlined_call_operand.vmem [shape: bf16[8,32], index: 0, kind: input, shape index: {}]   ;;  %s2089_s1 = inlined_call_operand.hbm [shape: bf16[32,512], index: 1, kind: input, shape index: {}]   ;;  %s2090_s2 = inlined_call_operand.vmem [shape: f32[1,512], index: 2, kind: input, shape index: {}]   ;;  %s2091_s3 = inlined_call_operand.hbm [shape: bf16[512,384], index: 3, kind: input, shape index: {}]   ;;  %s2092_s4 = inlined_call_operand.vmem [shape: f32[1,384], index: 4, kind: input, shape index: {}]   ;;  %s2093_s5 = inlined_call_operand.hbm [shape: bf16[384,128], index: 5, kind: input, shape index: {}]   ;;  %s2094_s6 = inlined_call_operand.vmem [shape: f32[1,128], index: 6, kind: input, shape index: {}]   ;;  %s2095_s7 = inlined_call_operand.vmem [shape: f32[8,128], index: 7, kind: output, shape index: {}]  }
   0x1   :  { %13 = vsyncpa [#allocation5], 0  ;;  %s35_s26 = sshll.u32 %s2091_s3, 4  ;;  %s1979_s27 = smov [#allocation4]   ;;  %s36_s26 = int_to_ptr.hbm [resolvable:$true] %s35_s26 }
   0x2   :  { %s37_s28 = sshll.u32 %s1979_s27, 4  ;;  %s20_s8 = sshll.u32 %s2089_s1, 4  ;;  %s38_s28 = int_to_ptr.vmem [resolvable:$true] %s37_s28  ;;  %s21_s8 = int_to_ptr.hbm [resolvable:$true] %s20_s8 }
   0x3   :  { %s1980_s9 = smov 192   ;;  %s1981_s10 = smov 12  }
   0x4   :  { %43 = dma.hbm_to_vmem [thread:$0]  %s36_s26, 12288, %s38_s28, [#allocation5], %s1980_s9, %s1980_s9, %s1981_s10  }
   0x5   :  { %s1982_s11 = smov [#allocation2]   ;;  %s1983_s13 = smov 256  }
   0x6   :  { %s22_s12 = sshll.u32 %s1982_s11, 4  ;;  %s1984_s14 = smov 16   ;;  %s23_s12 = int_to_ptr.vmem [resolvable:$true] %s22_s12 }
   0x7   :  { %28 = dma.hbm_to_vmem [thread:$0]  %s21_s8, 1024, %s23_s12, [#allocation3], %s1983_s13, %s1983_s13, %s1984_s14  }
   0x8   :  { %s50_s16 = sshll.u32 %s2093_s5, 4  ;;  %s1985_s17 = smov [#allocation6]   ;;  %s51_s16 = int_to_ptr.hbm [resolvable:$true] %s50_s16 }
   0x9   :  { %s52_s18 = sshll.u32 %s1985_s17, 4  ;;  %s1986_s19 = smov 64   ;;  %s53_s18 = int_to_ptr.vmem [resolvable:$true] %s52_s18 }
   0xa   :  { %s1987_s1 = smov 4  }
   0xb   :  { %58 = dma.hbm_to_vmem [thread:$0]  %s51_s16, 3072, %s53_s18, [#allocation5], %s1986_s19, %s1986_s19, %s1987_s1  }
   0xc   :  { %1975 = dma.done.wait [#allocation3], 1024  }
   0xd   :  { %1976 = vsyncadd [#allocation3], 4294966272 }
   0xe   :  { %1977 = dma.done.wait [#allocation5], 15360  }
   0xf   :  { %1978 = vsyncadd [#allocation5], 4294951936  ;;  %v1267_v0 = vld [vmem:[#allocation2 + $0x20] sm:$0xf]  ;;  %v1771_v1 = vld [vmem:[#allocation2 + $0x2c] sm:$0xf0] }
  0x10   :  { %v1769_v2 = vld [vmem:[#allocation2 + $0x24] sm:$0xf]  ;;  %v1268_v3 = vor.u32 %v1771_v1, %v1267_v0  ;;  %v1269_v4 = vld [vmem:[#allocation2 + $0x30] sm:$0xf0]  ;;  %v1275_v5 = vld [vmem:[#allocation2 + $0x28] sm:$0xf] }
  0x11   :  { %v1772_v6 = vld [vmem:[#allocation2 + $0x34] sm:$0xf0]  ;;  %v1272_v7 = vor.u32 %v1769_v2, %v1269_v4  ;;  %v1251_v9 = vld [vmem:[#allocation2] sm:$0xf]  ;;  %v1767_v10 = vld [vmem:[#allocation2 + $0xc] sm:$0xf0] }
  0x12   :  { %v1276_v8 = vor.u32 %v1772_v6, %v1275_v5  ;;  %v1765_v11 = vld [vmem:[#allocation2 + $0x4] sm:$0xf]  ;;  %143 = vmatpush.bf16.msra.mxu3 %v1268_v3  ;;  %v1252_v12 = vor.u32 %v1767_v10, %v1251_v9  ;;  %v1253_v13 = vld [vmem:[#allocation2 + $0x10] sm:$0xf0]  ;;  %v1259_v14 = vld [vmem:[#allocation2 + $0x8] sm:$0xf] }
  0x13   :  { %v1768_v15 = vld [vmem:[#allocation2 + $0x14] sm:$0xf0]  ;;  %156 = vmatpush.bf16.msra.mxu1 %v1272_v7  ;;  %v1256_v16 = vor.u32 %v1765_v11, %v1253_v13  ;;  %vm133_vm0 = vcmask 261120   ;;  %v1770_v18 = vld [vmem:[#allocation2 + $0x2c] sm:$0xf] }
  0x14   :  { %169 = vmatpush.bf16.msra.mxu2 %v1276_v8  ;;  %v1260_v17 = vor.u32 %v1768_v15, %v1259_v14  ;;  %v1277_v19 = vld [vmem:[#allocation2 + $0x38] sm:$0xf0]  ;;  %v2040_v20 = vld [vmem:[%s2088_s0] sm:$0xf]  ;;  %v1766_v22 = vld [vmem:[#allocation2 + $0xc] sm:$0xf] }
  0x15   :  { %v1280_v21 = vor.u32 %v1770_v18, %v1277_v19  ;;  %v1261_v23 = vld [vmem:[#allocation2 + $0x18] sm:$0xf0]  ;;  %v1467_v24 = vld [vmem:[#allocation4 + $0x168] sm:$0xf]  ;;  %v1819_v25 = vld [vmem:[#allocation4 + $0x170] sm:$0xf0] }
  0x16   :  { %v1455_v26 = vld [vmem:[#allocation4 + $0x150] sm:$0xf]  ;;  %v1816_v27 = vld [vmem:[#allocation4 + $0x158] sm:$0xf0]  ;;  %144 = vmatpush.bf16.msra.mxu3 %v1252_v12  ;;  %v1468_v28 = vor.u32 %v1819_v25, %v1467_v24  ;;  %v1371_v29 = vld [vmem:[#allocation4 + $0xa8] sm:$0xf]  ;;  %v1264_v34 = vor.u32 %v1766_v22, %v1261_v23 }
  0x17   :  { %v1795_v30 = vld [vmem:[#allocation4 + $0xb0] sm:$0xf0]  ;;  %v1563_v31 = vld [vmem:[#allocation4 + $0x228] sm:$0xf]  ;;  %157 = vmatpush.bf16.msra.mxu1 %v1256_v16  ;;  %v1456_v35 = vor.u32 %v1816_v27, %v1455_v26  ;;  %v1359_v37 = vld [vmem:[#allocation4 + $0x90] sm:$0xf] }
  0x18   :  { %170 = vmatpush.bf16.msra.mxu2 %v1260_v17  ;;  %v1372_v32 = vor.u32 %v1795_v30, %v1371_v29  ;;  %v1843_v33 = vld [vmem:[#allocation4 + $0x230] sm:$0xf0]  ;;  %v1792_v38 = vld [vmem:[#allocation4 + $0x98] sm:$0xf0]  ;;  %v1551_v39 = vld [vmem:[#allocation4 + $0x210] sm:$0xf] }
  0x19   :  { %v1564_v36 = vor.u32 %v1843_v33, %v1563_v31  ;;  %1281 = vmatmul.msk.bf16.vlgmr.msra.gmra.mxu3 %vm133_vm0, %v2040_v20  ;;  %v1443_v40 = vld [vmem:[#allocation4 + $0x138] sm:$0xf]  ;;  %v1813_v41 = vld [vmem:[#allocation4 + $0x140] sm:$0xf0]  ;;  %v1360_v42 = vor.u32 %v1792_v38, %v1359_v37  ;;  %v1840_v43 = vld [vmem:[#allocation4 + $0x218] sm:$0xf0] }
  0x1a   :  { %182 = vmatpush.bf16.msrb.mxu3 %v1280_v21  ;;  %845 = vmatpush.bf16.msra.mxu0 %v1372_v32  ;;  %v1347_v44 = vld [vmem:[#allocation4 + $0x78] sm:$0xf]  ;;  %v1789_v45 = vld [vmem:[#allocation4 + $0x80] sm:$0xf0]  ;;  %v1552_v46 = vor.u32 %v1840_v43, %v1551_v39  ;;  %v1444_v47 = vor.u32 %v1813_v41, %v1443_v40  ;;  %v1431_v50 = vld [vmem:[#allocation4 + $0x120] sm:$0xf] }
  0x1b   :  { %858 = vmatpush.bf16.msrb.mxu1 %v1468_v28  ;;  %1283 = vmatmul.msk.bf16.vlgmr.msra.gmra.mxu2 %vm133_vm0, %v2040_v20  ;;  %v1539_v48 = vld [vmem:[#allocation4 + $0x1f8] sm:$0xf]  ;;  %v1837_v49 = vld [vmem:[#allocation4 + $0x200] sm:$0xf0]  ;;  %v1810_v51 = vld [vmem:[#allocation4 + $0x128] sm:$0xf0]  ;;  %v1348_v52 = vor.u32 %v1789_v45, %v1347_v44 }
  0x1c   :  { %1282 = vmatmul.msk.bf16.vlgmr.msra.gmra.mxu1 %vm133_vm0, %v2040_v20  ;;  %871 = vmatpush.bf16.msrb.mxu2 %v1564_v36  ;;  %v1335_v53 = vld [vmem:[#allocation4 + $0x60] sm:$0xf]  ;;  %v1786_v54 = vld [vmem:[#allocation4 + $0x68] sm:$0xf0]  ;;  %v1540_v55 = vor.u32 %v1837_v49, %v1539_v48  ;;  %v1659_v56 = vld [vmem:[#allocation4 + $0x2e8] sm:$0xf]  ;;  %v1432_v58 = vor.u32 %v1810_v51, %v1431_v50 }
  0x1d   :  { %v1867_v57 = vld [vmem:[#allocation4 + $0x2f0] sm:$0xf0]  ;;  %v1527_v59 = vld [vmem:[#allocation4 + $0x1e0] sm:$0xf]  ;;  %v1834_v60 = vld [vmem:[#allocation4 + $0x1e8] sm:$0xf0]  ;;  %v1336_v0 = vor.u32 %v1786_v54, %v1335_v53 }
  0x1e   :  { %183 = vmatpush.bf16.msrb.mxu3 %v1264_v34  ;;  %846 = vmatpush.bf16.msra.mxu0 %v1360_v42  ;;  %v1660_v61 = vor.u32 %v1867_v57, %v1659_v56  ;;  %v1419_v62 = vld [vmem:[#allocation4 + $0x108] sm:$0xf]  ;;  %v1807_v63 = vld [vmem:[#allocation4 + $0x110] sm:$0xf0]  ;;  %v1647_v3 = vld [vmem:[#allocation4 + $0x2d0] sm:$0xf]  ;;  %v1528_v5 = vor.u32 %v1834_v60, %v1527_v59 }
  0x1f   :  { %859 = vmatpush.bf16.msrb.mxu1 %v1456_v35  ;;  %v1323_v1 = vld [vmem:[#allocation4 + $0x48] sm:$0xf]  ;;  %v1783_v2 = vld [vmem:[#allocation4 + $0x50] sm:$0xf0]  ;;  %v1864_v4 = vld [vmem:[#allocation4 + $0x2d8] sm:$0xf0]  ;;  %v1420_v7 = vor.u32 %v1807_v63, %v1419_v62 }
  0x20   :  { %872 = vmatpush.bf16.msrb.mxu2 %v1552_v46  ;;  %v1648_v6 = vor.u32 %v1864_v4, %v1647_v3  ;;  %v1407_v8 = vld [vmem:[#allocation4 + $0xf0] sm:$0xf]  ;;  %v1515_v9 = vld [vmem:[#allocation4 + $0x1c8] sm:$0xf]  ;;  %v1831_v10 = vld [vmem:[#allocation4 + $0x1d0] sm:$0xf0]  ;;  %v1324_v12 = vor.u32 %v1783_v2, %v1323_v1 }
  0x21   :  { %v1804_v11 = vld [vmem:[#allocation4 + $0xf8] sm:$0xf0]  ;;  %v1635_v13 = vld [vmem:[#allocation4 + $0x2b8] sm:$0xf]  ;;  %v1861_v14 = vld [vmem:[#allocation4 + $0x2c0] sm:$0xf0]  ;;  %v1516_v18 = vor.u32 %v1831_v10, %v1515_v9 }
  0x22   :  { %847 = vmatpush.bf16.msra.mxu0 %v1348_v52  ;;  %884 = vmatpush.bf16.msra.mxu3 %v1660_v61  ;;  %v1311_v15 = vld [vmem:[#allocation4 + $0x30] sm:$0xf]  ;;  %v1780_v16 = vld [vmem:[#allocation4 + $0x38] sm:$0xf0]  ;;  %v1636_v17 = vor.u32 %v1861_v14, %v1635_v13  ;;  %v1408_v21 = vor.u32 %v1804_v11, %v1407_v8  ;;  %v1623_v23 = vld [vmem:[#allocation4 + $0x2a0] sm:$0xf] }
  0x23   :  { %860 = vmatpush.bf16.msrb.mxu1 %v1444_v47  ;;  %v1503_v19 = vld [vmem:[#allocation4 + $0x1b0] sm:$0xf]  ;;  %v1828_v22 = vld [vmem:[#allocation4 + $0x1b8] sm:$0xf0]  ;;  %v1858_v24 = vld [vmem:[#allocation4 + $0x2a8] sm:$0xf0]  ;;  %v1312_v27 = vor.u32 %v1780_v16, %v1311_v15 }
  0x24   :  { %873 = vmatpush.bf16.msrb.mxu2 %v1540_v55  ;;  %v1395_v25 = vld [vmem:[#allocation4 + $0xd8] sm:$0xf]  ;;  %v1801_v26 = vld [vmem:[#allocation4 + $0xe0] sm:$0xf0]  ;;  %v1624_v30 = vor.u32 %v1858_v24, %v1623_v23  ;;  %v1504_v31 = vor.u32 %v1828_v22, %v1503_v19  ;;  %v1611_v32 = vld [vmem:[#allocation4 + $0x288] sm:$0xf] }
  0x25   :  { %v1299_v28 = vld [vmem:[#allocation4 + $0x18] sm:$0xf]  ;;  %v1777_v29 = vld [vmem:[#allocation4 + $0x20] sm:$0xf0]  ;;  %v1855_v33 = vld [vmem:[#allocation4 + $0x290] sm:$0xf0]  ;;  %v1396_v34 = vor.u32 %v1801_v26, %v1395_v25 }
  0x26   :  { %848 = vmatpush.bf16.msra.mxu0 %v1336_v0  ;;  %885 = vmatpush.bf16.msra.mxu3 %v1648_v6  ;;  %v1383_v35 = vld [vmem:[#allocation4 + $0xc0] sm:$0xf]  ;;  %v1491_v36 = vld [vmem:[#allocation4 + $0x198] sm:$0xf]  ;;  %v1825_v37 = vld [vmem:[#allocation4 + $0x1a0] sm:$0xf0]  ;;  %v1300_v40 = vor.u32 %v1777_v29, %v1299_v28  ;;  %v1612_v44 = vor.u32 %v1855_v33, %v1611_v32 }
  0x27   :  { %861 = vmatpush.bf16.msrb.mxu1 %v1432_v58  ;;  %v1798_v38 = vld [vmem:[#allocation4 + $0xc8] sm:$0xf0]  ;;  %v1469_v39 = vld [vmem:[#allocation4 + $0x174] sm:$0xf0]  ;;  %v1287_v41 = vld [vmem:[#allocation4] sm:$0xf]  ;;  %v1492_v45 = vor.u32 %v1825_v37, %v1491_v36 }
  0x28   :  { %874 = vmatpush.bf16.msrb.mxu2 %v1528_v5  ;;  %v1774_v42 = vld [vmem:[#allocation4 + $0x8] sm:$0xf0]  ;;  %v1373_v46 = vld [vmem:[#allocation4 + $0xb4] sm:$0xf0]  ;;  %v1599_v47 = vld [vmem:[#allocation4 + $0x270] sm:$0xf]  ;;  %v1384_v49 = vor.u32 %v1798_v38, %v1383_v35 }
  0x29   :  { %1284 = vmatmul.msk.bf16.vlgmr.msrb.gmra.mxu3 %vm133_vm0, %v2040_v20  ;;  %v1818_v20 = vld [vmem:[#allocation4 + $0x16c] sm:$0xf]  ;;  %v1852_v48 = vld [vmem:[#allocation4 + $0x278] sm:$0xf0]  ;;  %v1479_v50 = vld [vmem:[#allocation4 + $0x180] sm:$0xf]  ;;  %v1288_v54 = vor.u32 %v1774_v42, %v1287_v41 }
  0x2a   :  { %849 = vmatpush.bf16.msra.mxu0 %v1324_v12  ;;  %886 = vmatpush.bf16.msra.mxu3 %v1636_v17  ;;  %v1794_v43 = vld [vmem:[#allocation4 + $0xac] sm:$0xf]  ;;  %v1472_v52 = vor.u32 %v1818_v20, %v1469_v39  ;;  %v1815_v53 = vld [vmem:[#allocation4 + $0x154] sm:$0xf]  ;;  %v1565_v56 = vld [vmem:[#allocation4 + $0x234] sm:$0xf0]  ;;  %v1600_v61 = vor.u32 %v1852_v48, %v1599_v47 }
  0x2b   :  { %862 = vmatpush.bf16.msrb.mxu1 %v1420_v7  ;;  %v1822_v51 = vld [vmem:[#allocation4 + $0x188] sm:$0xf0]  ;;  %v1457_v57 = vld [vmem:[#allocation4 + $0x15c] sm:$0xf0]  ;;  %v1376_v58 = vor.u32 %v1794_v43, %v1373_v46  ;;  %v1791_v59 = vld [vmem:[#allocation4 + $0x94] sm:$0xf] }
  0x2c   :  { %875 = vmatpush.bf16.msrb.mxu2 %v1516_v18  ;;  %v1842_v55 = vld [vmem:[#allocation4 + $0x22c] sm:$0xf]  ;;  %v1361_v60 = vld [vmem:[#allocation4 + $0x9c] sm:$0xf0]  ;;  %v1480_v62 = vor.u32 %v1822_v51, %v1479_v50  ;;  %v1587_v63 = vld [vmem:[#allocation4 + $0x258] sm:$0xf]  ;;  %v1460_v2 = vor.u32 %v1815_v53, %v1457_v57 }
  0x2d   :  { %v1849_v0 = vld [vmem:[#allocation4 + $0x260] sm:$0xf0]  ;;  %v1568_v1 = vor.u32 %v1842_v55, %v1565_v56  ;;  %v1839_v3 = vld [vmem:[#allocation4 + $0x214] sm:$0xf]  ;;  %v1553_v4 = vld [vmem:[#allocation4 + $0x21c] sm:$0xf0]  ;;  %v1364_v7 = vor.u32 %v1791_v59, %v1361_v60 }
  0x2e   :  { %850 = vmatpush.bf16.msra.mxu0 %v1312_v27  ;;  %887 = vmatpush.bf16.msra.mxu3 %v1624_v30  ;;  %v1812_v5 = vld [vmem:[#allocation4 + $0x13c] sm:$0xf]  ;;  %v1445_v6 = vld [vmem:[#allocation4 + $0x144] sm:$0xf0]  ;;  %v1588_v8 = vor.u32 %v1849_v0, %v1587_v63  ;;  %v1556_v11 = vor.u32 %v1839_v3, %v1553_v4  ;;  %v1809_v15 = vld [vmem:[#allocation4 + $0x124] sm:$0xf] }
  0x2f   :  { %863 = vmatpush.bf16.msrb.mxu1 %v1408_v21  ;;  %v1788_v9 = vld [vmem:[#allocation4 + $0x7c] sm:$0xf]  ;;  %v1349_v10 = vld [vmem:[#allocation4 + $0x84] sm:$0xf0]  ;;  %v1448_v12 = vor.u32 %v1812_v5, %v1445_v6  ;;  %v1433_v16 = vld [vmem:[#allocation4 + $0x12c] sm:$0xf0] }
  0x30   :  { %876 = vmatpush.bf16.msrb.mxu2 %v1504_v31  ;;  %v1836_v13 = vld [vmem:[#allocation4 + $0x1fc] sm:$0xf]  ;;  %v1541_v14 = vld [vmem:[#allocation4 + $0x204] sm:$0xf0]  ;;  %v1352_v17 = vor.u32 %v1788_v9, %v1349_v10  ;;  %v1785_v18 = vld [vmem:[#allocation4 + $0x64] sm:$0xf]  ;;  %v1436_v22 = vor.u32 %v1809_v15, %v1433_v16 }
  0x31   :  { %v1337_v19 = vld [vmem:[#allocation4 + $0x6c] sm:$0xf0]  ;;  %v1544_v21 = vor.u32 %v1836_v13, %v1541_v14  ;;  %v1833_v23 = vld [vmem:[#allocation4 + $0x1e4] sm:$0xf]  ;;  %v1806_v25 = vld [vmem:[#allocation4 + $0x10c] sm:$0xf] }
  0x32   :  { %851 = vmatpush.bf16.msra.mxu0 %v1300_v40  ;;  %888 = vmatpush.bf16.msra.mxu3 %v1612_v44  ;;  %v1529_v24 = vld [vmem:[#allocation4 + $0x1ec] sm:$0xf0]  ;;  %v1421_v26 = vld [vmem:[#allocation4 + $0x114] sm:$0xf0]  ;;  %v1340_v27 = vor.u32 %v1785_v18, %v1337_v19  ;;  %v1803_v30 = vld [vmem:[#allocation4 + $0xf4] sm:$0xf] }
  0x33   :  { %864 = vmatpush.bf16.msrb.mxu1 %v1396_v34  ;;  %v1532_v28 = vor.u32 %v1833_v23, %v1529_v24  ;;  %v1424_v29 = vor.u32 %v1806_v25, %v1421_v26  ;;  %v1409_v31 = vld [vmem:[#allocation4 + $0xfc] sm:$0xf0]  ;;  %v1846_v34 = vld [vmem:[#allocation4 + $0x248] sm:$0xf0]  ;;  %v1325_v37 = vld [vmem:[#allocation4 + $0x54] sm:$0xf0] }
  0x34   :  { %877 = vmatpush.bf16.msrb.mxu2 %v1492_v45  ;;  %v1412_v32 = vor.u32 %v1803_v30, %v1409_v31  ;;  %v1575_v33 = vld [vmem:[#allocation4 + $0x240] sm:$0xf]  ;;  %v1782_v36 = vld [vmem:[#allocation4 + $0x4c] sm:$0xf]  ;;  %v1517_v39 = vld [vmem:[#allocation4 + $0x1d4] sm:$0xf0] }
  0x35   :  { %v1576_v35 = vor.u32 %v1846_v34, %v1575_v33  ;;  %v1830_v38 = vld [vmem:[#allocation4 + $0x1cc] sm:$0xf]  ;;  %v1328_v20 = vor.u32 %v1782_v36, %v1325_v37  ;;  %v1661_v41 = vld [vmem:[#allocation4 + $0x2f4] sm:$0xf0]  ;;  %v1800_v44 = vld [vmem:[#allocation4 + $0xdc] sm:$0xf] }
  0x36   :  { %852 = vmatpush.bf16.msra.mxu0 %v1288_v54  ;;  %889 = vmatpush.bf16.msra.mxu3 %v1600_v61  ;;  %v1866_v40 = vld [vmem:[#allocation4 + $0x2ec] sm:$0xf]  ;;  %v1520_v42 = vor.u32 %v1830_v38, %v1517_v39  ;;  %v1397_v45 = vld [vmem:[#allocation4 + $0xe4] sm:$0xf0]  ;;  %v1779_v47 = vld [vmem:[#allocation4 + $0x34] sm:$0xf] }
  0x37   :  { %865 = vmatpush.bf16.msrb.mxu1 %v1384_v49  ;;  %v1664_v43 = vor.u32 %v1866_v40, %v1661_v41  ;;  %v1400_v46 = vor.u32 %v1800_v44, %v1397_v45  ;;  %v1313_v48 = vld [vmem:[#allocation4 + $0x3c] sm:$0xf0]  ;;  %v1827_v49 = vld [vmem:[#allocation4 + $0x1b4] sm:$0xf]  ;;  %v1797_v56 = vld [vmem:[#allocation4 + $0xc4] sm:$0xf] }
  0x38   :  { %878 = vmatpush.bf16.msrb.mxu2 %v1480_v62  ;;  %v1316_v50 = vor.u32 %v1779_v47, %v1313_v48  ;;  %v1505_v51 = vld [vmem:[#allocation4 + $0x1bc] sm:$0xf0]  ;;  %v1385_v57 = vld [vmem:[#allocation4 + $0xcc] sm:$0xf0]  ;;  %v1776_v59 = vld [vmem:[#allocation4 + $0x1c] sm:$0xf] }
  0x39   :  { %v1649_v53 = vld [vmem:[#allocation4 + $0x2dc] sm:$0xf0]  ;;  %v1508_v54 = vor.u32 %v1827_v49, %v1505_v51  ;;  %v1301_v60 = vld [vmem:[#allocation4 + $0x24] sm:$0xf0]  ;;  %v1824_v61 = vld [vmem:[#allocation4 + $0x19c] sm:$0xf] }
  0x3a   :  { %897 = vmatpush.bf16.msrb.mxu0 %v1376_v58  ;;  %890 = vmatpush.bf16.msra.mxu3 %v1588_v8  ;;  %v1388_v58 = vor.u32 %v1797_v56, %v1385_v57  ;;  %v1304_v62 = vor.u32 %v1776_v59, %v1301_v60  ;;  %v1493_v63 = vld [vmem:[#allocation4 + $0x1a4] sm:$0xf0]  ;;  %v1860_v0 = vld [vmem:[#allocation4 + $0x2bc] sm:$0xf]  ;;  %v1773_v4 = vld [vmem:[#allocation4 + $0x4] sm:$0xf] }
  0x3b   :  { %910 = vmatpush.bf16.msra.mxu1 %v1472_v52  ;;  %v1863_v52 = vld [vmem:[#allocation4 + $0x2d4] sm:$0xf]  ;;  %v1289_v5 = vld [vmem:[#allocation4 + $0xc] sm:$0xf0]  ;;  %v1821_v6 = vld [vmem:[#allocation4 + $0x184] sm:$0xf] }
  0x3c   :  { %923 = vmatpush.bf16.msra.mxu2 %v1568_v1  ;;  %v1652_v55 = vor.u32 %v1863_v52, %v1649_v53  ;;  %v1637_v1 = vld [vmem:[#allocation4 + $0x2c4] sm:$0xf0]  ;;  %v1481_v8 = vld [vmem:[#allocation4 + $0x18c] sm:$0xf0]  ;;  %v1857_v9 = vld [vmem:[#allocation4 + $0x2a4] sm:$0xf] }
  0x3d   :  { %v1640_v3 = vor.u32 %v1860_v0, %v1637_v1  ;;  %v1625_v10 = vld [vmem:[#allocation4 + $0x2ac] sm:$0xf0]  ;;  %v1854_v13 = vld [vmem:[#allocation4 + $0x28c] sm:$0xf]  ;;  %v1613_v14 = vld [vmem:[#allocation4 + $0x294] sm:$0xf0] }
  0x3e   :  { %898 = vmatpush.bf16.msrb.mxu0 %v1364_v7  ;;  %891 = vmatpush.bf16.msra.mxu3 %v1576_v35  ;;  %v1292_v7 = vor.u32 %v1773_v4, %v1289_v5  ;;  %v1616_v15 = vor.u32 %v1854_v13, %v1613_v14  ;;  %v1851_v16 = vld [vmem:[#allocation4 + $0x274] sm:$0xf]  ;;  %v1848_v19 = vld [vmem:[#allocation4 + $0x25c] sm:$0xf]  ;;  %v2053_v23 = vld [vmem:[%s2090_s2] sm:$0xf] }
  0x3f   :  { %911 = vmatpush.bf16.msra.mxu1 %v1460_v2  ;;  %v1496_v2 = vor.u32 %v1824_v61, %v1493_v63  ;;  %v1845_v24 = vld [vmem:[#allocation4 + $0x244] sm:$0xf]  ;;  %v1577_v25 = vld [vmem:[#allocation4 + $0x24c] sm:$0xf0]  ;;  %v1820_v31 = vld [vmem:[#allocation4 + $0x178] sm:$0xf0] }
  0x40   :  { %924 = vmatpush.bf16.msra.mxu2 %v1556_v11  ;;  %v1484_v11 = vor.u32 %v1821_v6, %v1481_v8  ;;  %v1580_v26 = vor.u32 %v1845_v24, %v1577_v25  ;;  %v1475_v30 = vld [vmem:[#allocation4 + $0x170] sm:$0xf]  ;;  %v87_v34 = vperm.slane %v2053_v23, 2  ;;  %v1463_v38 = vld [vmem:[#allocation4 + $0x158] sm:$0xf] }
  0x41   :  { %v1476_v35 = vor.u32 %v1820_v31, %v1475_v30  ;;  %v1379_v41 = vld [vmem:[#allocation4 + $0xb0] sm:$0xf]  ;;  %v1844_v45 = vld [vmem:[#allocation4 + $0x238] sm:$0xf0]  ;;  %v1451_v51 = vld [vmem:[#allocation4 + $0x140] sm:$0xf] }
  0x42   :  { %899 = vmatpush.bf16.msrb.mxu0 %v1352_v17  ;;  %936 = vmatpush.bf16.msrb.mxu3 %v1664_v43  ;;  %v1601_v17 = vld [vmem:[#allocation4 + $0x27c] sm:$0xf0]  ;;  %v1571_v44 = vld [vmem:[#allocation4 + $0x230] sm:$0xf]  ;;  %v1814_v52 = vld [vmem:[#allocation4 + $0x148] sm:$0xf0] }
  0x43   :  { %912 = vmatpush.bf16.msra.mxu1 %v1448_v12  ;;  %v1628_v12 = vor.u32 %v1857_v9, %v1625_v10  ;;  %v1604_v18 = vor.u32 %v1851_v16, %v1601_v17  ;;  %v1793_v56 = vld [vmem:[#allocation4 + $0xa0] sm:$0xf0]  ;;  %v1452_v60 = vor.u32 %v1814_v52, %v1451_v51  ;;  %v1439_v63 = vld [vmem:[#allocation4 + $0x128] sm:$0xf]  ;;  %v1811_v0 = vld [vmem:[#allocation4 + $0x130] sm:$0xf0] }
  0x44   :  { %925 = vmatpush.bf16.msra.mxu2 %v1544_v21  ;;  %v1589_v21 = vld [vmem:[#allocation4 + $0x264] sm:$0xf0]  ;;  %v1841_v59 = vld [vmem:[#allocation4 + $0x220] sm:$0xf0]  ;;  %v1790_v4 = vld [vmem:[#allocation4 + $0x88] sm:$0xf0] }
  0x45   :  { %v1547_v5 = vld [vmem:[#allocation4 + $0x200] sm:$0xf]  ;;  %v1838_v6 = vld [vmem:[#allocation4 + $0x208] sm:$0xf0]  ;;  %v1427_v9 = vld [vmem:[#allocation4 + $0x110] sm:$0xf] }
  0x46   :  { %900 = vmatpush.bf16.msrb.mxu0 %v1340_v27  ;;  %937 = vmatpush.bf16.msrb.mxu3 %v1652_v55  ;;  %v86_v27 = vperm.slane %v2053_v23, 1  ;;  %v1367_v55 = vld [vmem:[#allocation4 + $0x98] sm:$0xf]  ;;  %v1808_v10 = vld [vmem:[#allocation4 + $0x118] sm:$0xf0] }
  0x47   :  { %913 = vmatpush.bf16.msra.mxu1 %v1436_v22  ;;  %v1592_v22 = vor.u32 %v1848_v19, %v1589_v21  ;;  %v1343_v13 = vld [vmem:[#allocation4 + $0x68] sm:$0xf]  ;;  %v1787_v14 = vld [vmem:[#allocation4 + $0x70] sm:$0xf0]  ;;  %v1428_v17 = vor.u32 %v1808_v10, %v1427_v9  ;;  %v1415_v21 = vld [vmem:[#allocation4 + $0xf8] sm:$0xf] }
  0x48   :  { %926 = vmatpush.bf16.msra.mxu2 %v1532_v28  ;;  %v1835_v16 = vld [vmem:[#allocation4 + $0x1f0] sm:$0xf0]  ;;  %v1344_v19 = vor.u32 %v1787_v14, %v1343_v13  ;;  %v1667_v31 = vld [vmem:[#allocation4 + $0x2f0] sm:$0xf]  ;;  %v1307_v51 = vld [vmem:[#allocation4 + $0x20] sm:$0xf] }
  0x49   :  { %v1619_v9 = vld [vmem:[#allocation4 + $0x290] sm:$0xf]  ;;  %v1856_v10 = vld [vmem:[#allocation4 + $0x298] sm:$0xf0]  ;;  %v1853_v13 = vld [vmem:[#allocation4 + $0x280] sm:$0xf0] }
  0x4a   :  { %901 = vmatpush.bf16.msrb.mxu0 %v1328_v20  ;;  %938 = vmatpush.bf16.msrb.mxu3 %v1640_v3  ;;  %v1817_v20 = vld [vmem:[#allocation4 + $0x160] sm:$0xf0]  ;;  %v1355_v3 = vld [vmem:[#allocation4 + $0x80] sm:$0xf] }
  0x4b   :  { %914 = vmatpush.bf16.msra.mxu1 %v1424_v29  ;;  %v1464_v47 = vor.u32 %v1817_v20, %v1463_v38  ;;  %v1356_v8 = vor.u32 %v1790_v4, %v1355_v3  ;;  %v1319_v20 = vld [vmem:[#allocation4 + $0x38] sm:$0xf]  ;;  %v1823_v3 = vld [vmem:[#allocation4 + $0x190] sm:$0xf0]  ;;  %v1631_v4 = vld [vmem:[#allocation4 + $0x2a8] sm:$0xf] }
  0x4c   :  { %927 = vmatpush.bf16.msra.mxu2 %v1520_v42  ;;  %v1796_v42 = vld [vmem:[#allocation4 + $0xb8] sm:$0xf0] }
  0x4e   :  { %902 = vmatpush.bf16.msrb.mxu0 %v1316_v50  ;;  %939 = vmatpush.bf16.msrb.mxu3 %v1628_v12  ;;  %v1380_v50 = vor.u32 %v1796_v42, %v1379_v41  ;;  %v1548_v12 = vor.u32 %v1838_v6, %v1547_v5  ;;  %v1511_v41 = vld [vmem:[#allocation4 + $0x1b8] sm:$0xf]  ;;  %v1829_v42 = vld [vmem:[#allocation4 + $0x1c0] sm:$0xf0]  ;;  %v1859_v5 = vld [vmem:[#allocation4 + $0x2b0] sm:$0xf0] }
  0x4f   :  { %915 = vmatpush.bf16.msra.mxu1 %v1412_v32  ;;  %v85_v32 = vperm.slane %v2053_v23, 0 }
  0x50   :  { %928 = vmatpush.bf16.msra.mxu2 %v1508_v54  ;;  %v1572_v54 = vor.u32 %v1844_v45, %v1571_v44  ;;  %v1655_v44 = vld [vmem:[#allocation4 + $0x2d8] sm:$0xf]  ;;  %v1865_v45 = vld [vmem:[#allocation4 + $0x2e0] sm:$0xf0] }
  0x51   :  { %v1656_v52 = vor.u32 %v1865_v45, %v1655_v44  ;;  %v1889_v44 = vld [vmem:[#allocation6 + $0xa0] sm:$0xff] }
  0x52   :  { %903 = vmatpush.bf16.msrb.mxu0 %v1304_v62  ;;  %940 = vmatpush.bf16.msrb.mxu3 %v1616_v15  ;;  %v1368_v62 = vor.u32 %v1793_v56, %v1367_v55  ;;  %v1535_v15 = vld [vmem:[#allocation4 + $0x1e8] sm:$0xf]  ;;  %v1499_v55 = vld [vmem:[#allocation4 + $0x1a0] sm:$0xf]  ;;  %v1826_v56 = vld [vmem:[#allocation4 + $0x1a8] sm:$0xf0] }
  0x53   :  { %916 = vmatpush.bf16.msra.mxu1 %v1400_v46  ;;  %v1536_v25 = vor.u32 %v1835_v16, %v1535_v15  ;;  %v1595_v15 = vld [vmem:[#allocation4 + $0x260] sm:$0xf]  ;;  %v1850_v16 = vld [vmem:[#allocation4 + $0x268] sm:$0xf0] }
  0x54   :  { %929 = vmatpush.bf16.msra.mxu2 %v1496_v2 }
  0x56   :  { %904 = vmatpush.bf16.msrb.mxu0 %v1292_v7  ;;  %941 = vmatpush.bf16.msrb.mxu3 %v1604_v18  ;;  %v1440_v7 = vor.u32 %v1811_v0, %v1439_v63  ;;  %v1295_v63 = vld [vmem:[#allocation4 + $0x8] sm:$0xf] }
  0x57   :  { %917 = vmatpush.bf16.msra.mxu1 %v1388_v58  ;;  %v1559_v58 = vld [vmem:[#allocation4 + $0x218] sm:$0xf] }
  0x58   :  { %930 = vmatpush.bf16.msra.mxu2 %v1484_v11  ;;  %v1560_v1 = vor.u32 %v1841_v59, %v1559_v58  ;;  %v88_v11 = vperm.slane %v2053_v23, 3  ;;  %v1523_v23 = vld [vmem:[#allocation4 + $0x1d0] sm:$0xf]  ;;  %v1643_v59 = vld [vmem:[#allocation4 + $0x2c0] sm:$0xf] }
  0x5a   :  { %942 = vmatpush.bf16.msrb.mxu3 %v1592_v22  ;;  %v1805_v22 = vld [vmem:[#allocation4 + $0x100] sm:$0xf0] }
  0x5b   :  { %v1416_v30 = vor.u32 %v1805_v22, %v1415_v21  ;;  %v1876_v21 = vld [vmem:[#allocation6 + $0x38] sm:$0xff]  ;;  %v1875_v22 = vld [vmem:[#allocation6 + $0x30] sm:$0xff] }
  0x5e   :  { %943 = vmatpush.bf16.msrb.mxu3 %v1580_v26  ;;  %v1331_v26 = vld [vmem:[#allocation4 + $0x50] sm:$0xf] }
  0x99   :  { %v159_v28 = vpop.f32.mrf.mxu1 }
  0x9a   :  { %v160_v29 = vadd.f32 %v159_v28, %v86_v27  ;;  %v1784_v27 = vld [vmem:[#allocation4 + $0x58] sm:$0xf0] }
  0x9b   :  { %v1832_v28 = vld [vmem:[#allocation4 + $0x1d8] sm:$0xf0] }
  0x9c   :  { %v190_v33 = vmax.f32 %v160_v29, 0.0  ;;  %v146_v37 = vpop.f32.mrf.mxu3  ;;  %v1524_v38 = vor.u32 %v1832_v28, %v1523_v23  ;;  %v1870_v23 = vld [vmem:[#allocation6 + $0x8] sm:$0xff] }
  0x9d   :  { %v147_v39 = vadd.f32 %v146_v37, %v85_v32  ;;  %v1868_v32 = vld [vmem:[#allocation4 + $0x2f8] sm:$0xf0]  ;;  %v1332_v37 = vor.u32 %v1784_v27, %v1331_v26  ;;  %v1871_v26 = vld [vmem:[#allocation6 + $0x10] sm:$0xff]  ;;  %v1882_v28 = vld [vmem:[#allocation6 + $0x68] sm:$0xff] }
  0x9e   :  { %v2058_v36 = vpack.c.bf16 %v190_v33, %v190_v33  ;;  %v172_v40 = vpop.f32.mrf.mxu2  ;;  %v1403_v33 = vld [vmem:[#allocation4 + $0xe0] sm:$0xf]  ;;  %v1883_v27 = vld [vmem:[#allocation6 + $0x70] sm:$0xff] }
  0x9f   :  { %v173_v43 = vadd.f32 %v172_v40, %v87_v34  ;;  %v189_v46 = vmax.f32 %v147_v39, 0.0  ;;  %v1802_v34 = vld [vmem:[#allocation4 + $0xe8] sm:$0xf0]  ;;  %v1668_v39 = vor.u32 %v1868_v32, %v1667_v31  ;;  %v1781_v40 = vld [vmem:[#allocation4 + $0x40] sm:$0xf0]  ;;  %v1880_v32 = vld [vmem:[#allocation6 + $0x58] sm:$0xff] }
  0xa0   :  { %866 = vmatmul.bf16.vlgmr.msrb.gmra.mxu1 %v2058_v36 }
  0xa1   :  { %962 = vmatpush.bf16.msrb.mxu1 %v1476_v35  ;;  %v161_v48 = vpop.f32.mrf.mxu1  ;;  %v191_v49 = vmax.f32 %v173_v43, 0.0  ;;  %v2061_v53 = vpack.c.bf16 %v189_v46, %v189_v46  ;;  %v1404_v43 = vor.u32 %v1802_v34, %v1403_v33  ;;  %v1892_v33 = vld [vmem:[#allocation6 + $0xb8] sm:$0xff] }
  0xa2   :  { %v1799_v48 = vld [vmem:[#allocation4 + $0xd0] sm:$0xf0] }
  0xa3   :  { %v2063_v57 = vpack.c.bf16 %v191_v49, %v191_v49  ;;  %853 = vmatmul.bf16.vlgmr.msra.gmra.mxu0 %v2061_v53  ;;  %v1320_v49 = vor.u32 %v1781_v40, %v1319_v20  ;;  %v1878_v20 = vld [vmem:[#allocation6 + $0x48] sm:$0xff] }
  0xa4   :  { %v148_v61 = vpop.f32.mrf.mxu3  ;;  %949 = vmatpush.bf16.msra.mxu0 %v1380_v50  ;;  %v1512_v50 = vor.u32 %v1829_v42, %v1511_v41  ;;  %v325_v41 = vld [vmem:[%s2092_s4] sm:$0x7] }
  0xa5   :  { %963 = vmatpush.bf16.msrb.mxu1 %v1464_v47  ;;  %879 = vmatmul.bf16.vlgmr.msrb.gmra.mxu2 %v2063_v57  ;;  %v1391_v47 = vld [vmem:[#allocation4 + $0xc8] sm:$0xf]  ;;  %v327_v45 = vperm.slane %v325_v41, 0 }
  0xa6   :  { %975 = vmatpush.bf16.msrb.mxu2 %v1572_v54  ;;  %v174_v2 = vpop.f32.mrf.mxu2  ;;  %v1778_v54 = vld [vmem:[#allocation4 + $0x28] sm:$0xf0]  ;;  %v1392_v58 = vor.u32 %v1799_v48, %v1391_v47  ;;  %v1888_v47 = vld [vmem:[#allocation6 + $0x98] sm:$0xff] }
  0xa7   :  { %v1308_v61 = vor.u32 %v1778_v54, %v1307_v51  ;;  %v1487_v2 = vld [vmem:[#allocation4 + $0x188] sm:$0xf] }
  0xa8   :  { %950 = vmatpush.bf16.msra.mxu0 %v1368_v62  ;;  %v1500_v62 = vor.u32 %v1826_v56, %v1499_v55 }
  0xa9   :  { %964 = vmatpush.bf16.msrb.mxu1 %v1452_v60  ;;  %v1862_v60 = vld [vmem:[#allocation4 + $0x2c8] sm:$0xf0] }
  0xaa   :  { %976 = vmatpush.bf16.msrb.mxu2 %v1560_v1  ;;  %v1644_v0 = vor.u32 %v1862_v60, %v1643_v59  ;;  %v1775_v1 = vld [vmem:[#allocation4 + $0x10] sm:$0xf0] }
  0xab   :  { %v1296_v6 = vor.u32 %v1775_v1, %v1295_v63  ;;  %v1885_v63 = vld [vmem:[#allocation6 + $0x80] sm:$0xff] }
  0xac   :  { %v185_v18 = vpop.f32.mrf.mxu3  ;;  %951 = vmatpush.bf16.msra.mxu0 %v1356_v8  ;;  %v1632_v8 = vor.u32 %v1859_v5, %v1631_v4 }
  0xad   :  { %965 = vmatpush.bf16.msrb.mxu1 %v1440_v7  ;;  %v186_v24 = vadd.f32 %v185_v18, %v88_v11  ;;  %v1488_v7 = vor.u32 %v1823_v3, %v1487_v2  ;;  %v1620_v11 = vor.u32 %v1856_v10, %v1619_v9  ;;  %v1847_v18 = vld [vmem:[#allocation4 + $0x250] sm:$0xf0] }
  0xae   :  { %977 = vmatpush.bf16.msrb.mxu2 %v1548_v12  ;;  %v1607_v12 = vld [vmem:[#allocation4 + $0x278] sm:$0xf] }
  0xaf   :  { %v192_v29 = vmax.f32 %v186_v24, 0.0  ;;  %v1608_v14 = vor.u32 %v1853_v13, %v1607_v12  ;;  %v1872_v24 = vld [vmem:[#allocation6 + $0x18] sm:$0xff] }
  0xb0   :  { %918 = vmatmul.bf16.vlgmr.msra.gmra.mxu1 %v2058_v36  ;;  %952 = vmatpush.bf16.msra.mxu0 %v1344_v19 }
  0xb1   :  { %966 = vmatpush.bf16.msrb.mxu1 %v1428_v17  ;;  %v2069_v35 = vpack.c.bf16 %v192_v29, %v192_v29  ;;  %v1583_v17 = vld [vmem:[#allocation4 + $0x248] sm:$0xf]  ;;  %v1869_v29 = vld [vmem:[#allocation6] sm:$0xff] }
  0xb2   :  { %978 = vmatpush.bf16.msrb.mxu2 %v1536_v25  ;;  %v1584_v19 = vor.u32 %v1847_v18, %v1583_v17  ;;  %v1884_v25 = vld [vmem:[#allocation6 + $0x78] sm:$0xff] }
  0xb3   :  { %892 = vmatmul.bf16.vlgmr.msra.gmra.mxu3 %v2069_v35  ;;  %905 = vmatmul.bf16.vlgmr.msrb.gmra.mxu0 %v2061_v53 }
  0xb4   :  { %v187_v46 = vpop.f32.mrf.mxu3  ;;  %953 = vmatpush.bf16.msra.mxu0 %v1332_v37  ;;  %988 = vmatpush.bf16.msra.mxu3 %v1668_v39  ;;  %v1891_v37 = vld [vmem:[#allocation6 + $0xb0] sm:$0xff]  ;;  %v1890_v39 = vld [vmem:[#allocation6 + $0xa8] sm:$0xff] }
  0xb5   :  { %967 = vmatpush.bf16.msrb.mxu1 %v1416_v30  ;;  %931 = vmatmul.bf16.vlgmr.msra.gmra.mxu2 %v2063_v57  ;;  %v1881_v30 = vld [vmem:[#allocation6 + $0x60] sm:$0xff] }
  0xb6   :  { %979 = vmatpush.bf16.msrb.mxu2 %v1524_v38 }
  0xb8   :  { %954 = vmatpush.bf16.msra.mxu0 %v1320_v49  ;;  %989 = vmatpush.bf16.msra.mxu3 %v1656_v52 }
  0xb9   :  { %968 = vmatpush.bf16.msrb.mxu1 %v1404_v43  ;;  %v1877_v43 = vld [vmem:[#allocation6 + $0x40] sm:$0xff] }
  0xba   :  { %980 = vmatpush.bf16.msrb.mxu2 %v1512_v50  ;;  %v1887_v50 = vld [vmem:[#allocation6 + $0x90] sm:$0xff] }
  0xbc   :  { %955 = vmatpush.bf16.msra.mxu0 %v1308_v61  ;;  %990 = vmatpush.bf16.msra.mxu3 %v1644_v0  ;;  %v328_v0 = vperm.slane %v325_v41, 1 }
  0xbd   :  { %969 = vmatpush.bf16.msrb.mxu1 %v1392_v58  ;;  %v1886_v58 = vld [vmem:[#allocation6 + $0x88] sm:$0xff] }
  0xbe   :  { %981 = vmatpush.bf16.msrb.mxu2 %v1500_v62 }
  0xc0   :  { %970 = vmatmul.bf16.vlgmr.msrb.gmra.mxu1 %v2058_v36  ;;  %956 = vmatpush.bf16.msra.mxu0 %v1296_v6  ;;  %v1596_v36 = vor.u32 %v1850_v16, %v1595_v15  ;;  %v329_v16 = vperm.slane %v325_v41, 2 }
  0xc1   :  { %991 = vmatpush.bf16.msra.mxu3 %v1632_v8  ;;  %1216 = vmatpush.bf16.msra.mxu1 %v1884_v25 }
  0xc2   :  { %982 = vmatpush.bf16.msrb.mxu2 %v1488_v7 }
  0xc3   :  { %944 = vmatmul.bf16.vlgmr.msrb.gmra.mxu3 %v2069_v35  ;;  %957 = vmatmul.bf16.vlgmr.msra.gmra.mxu0 %v2061_v53  ;;  %v1874_v53 = vld [vmem:[#allocation6 + $0x28] sm:$0xff] }
  0xc4   :  { %1203 = vmatpush.bf16.msrb.mxu0 %v1876_v21 }
  0xc5   :  { %983 = vmatmul.bf16.vlgmr.msrb.gmra.mxu2 %v2063_v57  ;;  %992 = vmatpush.bf16.msra.mxu3 %v1620_v11  ;;  %v1873_v57 = vld [vmem:[#allocation6 + $0x20] sm:$0xff] }
  0xc6   :  { %1217 = vmatpush.bf16.msra.mxu1 %v1883_v27  ;;  %1229 = vmatpush.bf16.msra.mxu2 %v1892_v33 }
  0xc8   :  { %1204 = vmatpush.bf16.msrb.mxu0 %v1875_v22 }
  0xc9   :  { %993 = vmatpush.bf16.msra.mxu3 %v1608_v14 }
  0xca   :  { %1218 = vmatpush.bf16.msra.mxu1 %v1882_v28  ;;  %1230 = vmatpush.bf16.msra.mxu2 %v1891_v37 }
  0xcc   :  { %1205 = vmatpush.bf16.msrb.mxu0 %v1874_v53 }
  0xcd   :  { %994 = vmatpush.bf16.msra.mxu3 %v1596_v36 }
  0xce   :  { %1219 = vmatpush.bf16.msra.mxu1 %v1881_v30  ;;  %1231 = vmatpush.bf16.msra.mxu2 %v1890_v39 }
  0xd0   :  { %1206 = vmatpush.bf16.msrb.mxu0 %v1873_v57 }
  0xd1   :  { %995 = vmatpush.bf16.msra.mxu3 %v1584_v19 }
  0xd2   :  { %1220 = vmatpush.bf16.msra.mxu1 %v1880_v32  ;;  %1232 = vmatpush.bf16.msra.mxu2 %v1889_v44 }
  0xd4   :  { %996 = vmatmul.bf16.vlgmr.msra.gmra.mxu3 %v2069_v35  ;;  %1207 = vmatpush.bf16.msrb.mxu0 %v1872_v24  ;;  %v1879_v35 = vld [vmem:[#allocation6 + $0x50] sm:$0xff] }
  0xd6   :  { %1221 = vmatpush.bf16.msra.mxu1 %v1879_v35  ;;  %1233 = vmatpush.bf16.msra.mxu2 %v1888_v47 }
  0xd8   :  { %1208 = vmatpush.bf16.msrb.mxu0 %v1871_v26 }
  0xda   :  { %1222 = vmatpush.bf16.msra.mxu1 %v1878_v20  ;;  %1234 = vmatpush.bf16.msra.mxu2 %v1887_v50 }
  0xdc   :  { %1209 = vmatpush.bf16.msrb.mxu0 %v1870_v23 }
  0xde   :  { %1223 = vmatpush.bf16.msra.mxu1 %v1877_v43  ;;  %1235 = vmatpush.bf16.msra.mxu2 %v1886_v58 }
  0xe0   :  { %1210 = vmatpush.bf16.msrb.mxu0 %v1869_v29  ;;  %v1902_v29 = vld [vmem:[%s2094_s6] ss:$0 sm:$0xff] }
  0xe2   :  { %1236 = vmatpush.bf16.msra.mxu2 %v1885_v63 }
 0x11d   :  { %v867_v31 = vpop.f32.mrf.mxu1 }
 0x120   :  { %v854_v34 = vpop.f32.mrf.mxu0 }
 0x121   :  { %v855_v48 = vadd.f32 %v854_v34, %v327_v45 }
 0x123   :  { %v868_v52 = vadd.f32 %v867_v31, %v855_v48 }
 0x125   :  { %v869_v38 = vpop.f32.mrf.mxu1 }
 0x128   :  { %v880_v40 = vpop.f32.mrf.mxu2  ;;  %v856_v42 = vpop.f32.mrf.mxu0 }
 0x129   :  { %v881_v55 = vadd.f32 %v880_v40, %v868_v52 }
 0x12d   :  { %v919_v46 = vpop.f32.mrf.mxu1 }
 0x130   :  { %v882_v49 = vpop.f32.mrf.mxu2  ;;  %v906_v51 = vpop.f32.mrf.mxu0 }
 0x131   :  { %v907_v4 = vadd.f32 %v906_v51, %v328_v0 }
 0x133   :  { %v920_v7 = vadd.f32 %v919_v46, %v907_v4 }
 0x135   :  { %v921_v54 = vpop.f32.mrf.mxu1 }
 0x136   :  { %v893_v56 = vpop.f32.mrf.mxu3 }
 0x137   :  { %v894_v59 = vadd.f32 %v893_v56, %v881_v55 }
 0x138   :  { %v932_v60 = vpop.f32.mrf.mxu2  ;;  %v908_v62 = vpop.f32.mrf.mxu0 }
 0x139   :  { %v1001_v61 = vmax.f32 %v894_v59, 0.0  ;;  %v933_v9 = vadd.f32 %v932_v60, %v920_v7 }
 0x13b   :  { %v1004_v1 = vpack.c.bf16 %v1001_v61, %v1001_v61 }
 0x13d   :  { %v971_v2 = vpop.f32.mrf.mxu1  ;;  %1211 = vmatmul.bf16.vlgmr.msrb.gmra.mxu0 %v1004_v1 }
 0x13e   :  { %v895_v3 = vpop.f32.mrf.mxu3 }
 0x140   :  { %v934_v5 = vpop.f32.mrf.mxu2  ;;  %v958_v6 = vpop.f32.mrf.mxu0 }
 0x141   :  { %v959_v18 = vadd.f32 %v958_v6, %v329_v16 }
 0x143   :  { %v972_v19 = vadd.f32 %v971_v2, %v959_v18 }
 0x145   :  { %v973_v8 = vpop.f32.mrf.mxu1 }
 0x146   :  { %v945_v10 = vpop.f32.mrf.mxu3 }
 0x147   :  { %v946_v11 = vadd.f32 %v945_v10, %v933_v9 }
 0x148   :  { %v984_v12 = vpop.f32.mrf.mxu2  ;;  %v960_v14 = vpop.f32.mrf.mxu0 }
 0x149   :  { %v1002_v13 = vmax.f32 %v946_v11, 0.0  ;;  %v985_v21 = vadd.f32 %v984_v12, %v972_v19 }
 0x14b   :  { %v1005_v15 = vpack.c.bf16 %v1002_v13, %v1002_v13 }
 0x14d   :  { %1224 = vmatmul.bf16.vlgmr.msra.gmra.mxu1 %v1005_v15 }
 0x14e   :  { %v947_v36 = vpop.f32.mrf.mxu3 }
 0x150   :  { %v986_v17 = vpop.f32.mrf.mxu2 }
 0x157   :  { %v997_v22 = vpop.f32.mrf.mxu3 }
 0x158   :  { %v998_v53 = vadd.f32 %v997_v22, %v985_v21 }
 0x15a   :  { %v1003_v57 = vmax.f32 %v998_v53, 0.0 }
 0x15c   :  { %v1006_v24 = vpack.c.bf16 %v1003_v57, %v1003_v57 }
 0x15e   :  { %1237 = vmatmul.bf16.vlgmr.msra.gmra.mxu2 %v1006_v24 }
 0x15f   :  { %v999_v25 = vpop.f32.mrf.mxu3 }
 0x1ba   :  { %v1212_v26 = vpop.f32.mrf.mxu0 }
 0x1bb   :  { %v1213_v30 = vadd.f32 %v1902_v29, %v1212_v26 }
 0x1c2   :  { %v1214_v27 = vpop.f32.mrf.mxu0 }
 0x1ca   :  { %v1225_v23 = vpop.f32.mrf.mxu1 }
 0x1cb   :  { %v1226_v31 = vadd.f32 %v1225_v23, %v1213_v30 }
 0x1d2   :  { %v1227_v28 = vpop.f32.mrf.mxu1 }
 0x1e1   :  { %v1238_v32 = vpop.f32.mrf.mxu2 }
 0x1e2   :  { %v1239_v33 = vadd.f32 %v1238_v32, %v1226_v31 }
 0x1e4   :  { %1242 = vst [vmem:[%s2095_s7] sm:$0xff] %v1239_v33 }
 0x1e9   :  { %v1240_v34 = vpop.f32.mrf.mxu2 }
 0x1ea   :  { %1247 = vsyncpa [#allocation3], 1 }
 0x1eb   :  { %1248 = vsyncpa [#allocation5], 1 }

</bundles_post_ra>
